<compile_context>
chip_gen: v7x
topology: tpu7x:2x2x1
jax: 0.10.0
libtpu: 0.0.40
codegen_flags: <defaults>
</compile_context>

<pallas_src>
import jax
import jax.numpy as jnp
from jax.experimental import pallas as pl
from jax.experimental.pallas import tpu as pltpu


INPUT_SIZE = 512            # feature dim implied by fc2/fc4 fan-in
H2 = 256                    # fc2 out
H4 = INPUT_SIZE             # fc4 out
HCAT = H2 + H4              # fused output width (768)


def _round_up(n, m):
    return ((n + m - 1) // m) * m


def _fused_fc_kernel(x_ref, w_ref, b_ref, o_ref):
    # x: [TB, 512] f32 -> bf16 for the MXU; w: [512, 768] bf16; b: [1, 768] f32.
    x = x_ref[...].astype(jnp.bfloat16)
    acc = jnp.dot(x, w_ref[...], preferred_element_type=jnp.float32)
    o_ref[...] = (acc + b_ref[...]).astype(o_ref.dtype)


def autoencoder_decoder_forward(x, wcat, bcat):
    """x: [B, 512] f32. wcat: [512, 768] bf16 (W2|W4). bcat: [1, 768] f32.

    Returns (out2 [B, 256] f32, out4 [B, 512] f32).
    """
    B, F = x.shape
    assert F == INPUT_SIZE
    assert wcat.shape == (INPUT_SIZE, HCAT) and bcat.shape == (1, HCAT)

    # Batch tile: big enough to hide per-step overhead, padded to sublane tile.
    TB = min(512, _round_up(B, 8))
    B_pad = _round_up(B, TB)
    if B_pad != B:
        x = jnp.pad(x, ((0, B_pad - B), (0, 0)))

    out = pl.pallas_call(
        _fused_fc_kernel,
        out_shape=jax.ShapeDtypeStruct((B_pad, HCAT), jnp.float32),
        grid=(B_pad // TB,),
        in_specs=[
            pl.BlockSpec((TB, F), lambda i: (i, 0)),         # activations: tiled over batch
            pl.BlockSpec((F, HCAT), lambda i: (0, 0)),        # fused weights: VMEM-resident
            pl.BlockSpec((1, HCAT), lambda i: (0, 0)),        # fused bias
        ],
        out_specs=pl.BlockSpec((TB, HCAT), lambda i: (i, 0)), # lane-dense [TB, 768] store
        compiler_params=pltpu.CompilerParams(
            dimension_semantics=("parallel",),
            vmem_limit_bytes=8 << 20,
        ),
    )(x, wcat, bcat)

    out = out[:B]
    return out[:, :H2], out[:, H2:]


def init_params(key):
    """Deterministic init mimicking PyTorch Linear (uniform +-1/sqrt(fan_in)).

    Weights stored as [fan_in, fan_out] (transposed vs torch) so the kernel
    does x @ W directly.
    """
    def linear(k, fan_in, fan_out):
        kw, kb = jax.random.split(k)
        bound = 1.0 / (fan_in ** 0.5)
        w = jax.random.uniform(kw, (fan_in, fan_out), jnp.float32, -bound, bound)
        b = jax.random.uniform(kb, (1, fan_out), jnp.float32, -bound, bound)
        return w, b

    k1, k2, k3, k4 = jax.random.split(key, 4)
    w1, b1 = linear(k1, INPUT_SIZE, 512)   # fc1 (dead in forward)
    w2, b2 = linear(k2, 512, H2)           # fc2: 512 -> 256
    w3, b3 = linear(k3, 256, 512)          # fc3 (dead / shape-incompatible)
    w4, b4 = linear(k4, 512, H4)           # fc4: 512 -> input_size
    return {"w1": w1, "b1": b1, "w2": w2, "b2": b2,
            "w3": w3, "b3": b3, "w4": w4, "b4": b4}


def pack_fused_params(params):
    """One-time host-side packing: W2|W4 -> [512, 768] bf16, b2|b4 -> [1, 768] f32."""
    wcat = jnp.concatenate([params["w2"], params["w4"]], axis=1).astype(jnp.bfloat16)
    bcat = jnp.concatenate([params["b2"], params["b4"]], axis=1).astype(jnp.float32)
    return wcat, bcat


if __name__ == "__main__":
    key = jax.random.PRNGKey(0)
    kx, kp = jax.random.split(key)

    B = 8
    x = jax.random.normal(kx, (B, INPUT_SIZE), jnp.float32)
    params = init_params(kp)
    wcat, bcat = pack_fused_params(params)

    out2, out4 = autoencoder_decoder_forward(x, wcat, bcat)
    out2, out4 = jax.block_until_ready((out2, out4))

    assert out2.shape == (B, H2) and out4.shape == (B, H4)

    # Reference using the same bf16 weights + f32 accumulation (tight check).
    ref = jnp.dot(x.astype(jnp.bfloat16), wcat,
                  preferred_element_type=jnp.float32) + bcat
    ref2, ref4 = ref[:, :H2], ref[:, H2:]
    assert jnp.allclose(out2, ref2, atol=1e-3, rtol=1e-3)
    assert jnp.allclose(out4, ref4, atol=1e-3, rtol=1e-3)

    # Sanity check vs. the original f32-weight semantics (bf16 rounding slack).
    ref2_f32 = x @ params["w2"] + params["b2"]
    ref4_f32 = x @ params["w4"] + params["b4"]
    assert jnp.allclose(out2, ref2_f32, atol=5e-2, rtol=5e-2)
    assert jnp.allclose(out4, ref4_f32, atol=5e-2, rtol=5e-2)

    print("KERNEL_OK")
</pallas_src>

<mosaic_0001>
module attributes {stable_mosaic.version = 11 : i64} {
  func.func @_fused_fc_kernel(%arg0: i32, %arg1: memref<8x512xf32, #tpu.memory_space<vmem>>, %arg2: memref<512x768xbf16, #tpu.memory_space<vmem>>, %arg3: memref<1x768xf32, #tpu.memory_space<vmem>>, %arg4: memref<8x768xf32, #tpu.memory_space<vmem>>) attributes {dimension_semantics = [#tpu.dimension_semantics<parallel>], iteration_bounds = array<i64: 1>, scalar_prefetch = 0 : i64, scratch_operands = 0 : i64, tpu.core_type = #tpu.core_type<tc>, window_params = [{transform_indices = @transform_0, window_bounds = array<i64: 8, 512>}, {pipeline_mode = #tpu.pipeline_mode<synchronous>, transform_indices = @transform_1, window_bounds = array<i64: 512, 768>}, {pipeline_mode = #tpu.pipeline_mode<synchronous>, transform_indices = @transform_2, window_bounds = array<i64: 1, 768>}, {transform_indices = @transform_3, window_bounds = array<i64: 8, 768>}]} {
    %c0 = arith.constant 0 : index
    %c0_0 = arith.constant 0 : index
    %0 = vector.load %arg1[%c0, %c0_0] : memref<8x512xf32, #tpu.memory_space<vmem>>, vector<8x512xf32>
    %1 = arith.truncf %0 : vector<8x512xf32> to vector<8x512xbf16>
    %c0_1 = arith.constant 0 : index
    %c0_2 = arith.constant 0 : index
    %2 = vector.load %arg2[%c0_1, %c0_2] : memref<512x768xbf16, #tpu.memory_space<vmem>>, vector<512x768xbf16>
    %cst = arith.constant dense<0.000000e+00> : vector<8x768xf32>
    %3 = tpu.matmul %1, %2, %cst {dimension_numbers = #tpu.dot_dimension_numbers<[1], [0], [0], [1], [0, 0, 1, 1], [], []>} : vector<8x512xbf16>, vector<512x768xbf16>, vector<8x768xf32> -> vector<8x768xf32>
    %c0_3 = arith.constant 0 : index
    %c0_4 = arith.constant 0 : index
    %4 = vector.load %arg3[%c0_3, %c0_4] : memref<1x768xf32, #tpu.memory_space<vmem>>, vector<1x768xf32>
    %5 = vector.broadcast %4 : vector<1x768xf32> to vector<8x768xf32>
    %6 = arith.addf %3, %5 : vector<8x768xf32>
    %c0_5 = arith.constant 0 : index
    %c0_6 = arith.constant 0 : index
    %7 = vector.load %arg4[%c0_5, %c0_6] : memref<8x768xf32, #tpu.memory_space<vmem>>, vector<8x768xf32>
    tpu.vector_store %arg4[%c0_5, %c0_6], %6 {strides = array<i32>} : memref<8x768xf32, #tpu.memory_space<vmem>>, vector<8x768xf32>,
    return
  }
  func.func @transform_0(%arg0: i32) -> (i32, i32) {
    %c0_i32 = arith.constant 0 : i32
    %c0_i32_0 = arith.constant 0 : i32
    return %arg0, %c0_i32 : i32, i32
  }
  func.func @transform_1(%arg0: i32) -> (i32, i32) {
    %c0_i32 = arith.constant 0 : i32
    %c0_i32_0 = arith.constant 0 : i32
    %c0_i32_1 = arith.constant 0 : i32
    return %c0_i32, %c0_i32_0 : i32, i32
  }
  func.func @transform_2(%arg0: i32) -> (i32, i32) {
    %c0_i32 = arith.constant 0 : i32
    %c0_i32_0 = arith.constant 0 : i32
    %c0_i32_1 = arith.constant 0 : i32
    return %c0_i32, %c0_i32_0 : i32, i32
  }
  func.func @transform_3(%arg0: i32) -> (i32, i32) {
    %c0_i32 = arith.constant 0 : i32
    %c0_i32_0 = arith.constant 0 : i32
    return %arg0, %c0_i32 : i32, i32
  }
}

</mosaic_0001>

<bundles_post_ra>
// kernel: tpu_custom_call.1
= control target key start
LH: loop header
LB: loop body
LE: loop exit
PB: predicated region body
PF: predicated region fallthrough
CT: control target
= control target key end

     0   :  { %8 = vsyncpa [#allocation3], 0  ;;  %s2165_s0 = inlined_call_operand.hbm [shape: f32[8,512], index: 0, kind: input, shape index: {}]   ;;  %s2166_s1 = inlined_call_operand.hbm [shape: bf16[512,768], index: 1, kind: input, shape index: {}]   ;;  %s2167_s2 = inlined_call_operand.vmem [shape: f32[1,768], index: 2, kind: input, shape index: {}]   ;;  %s2168_s3 = inlined_call_operand.hbm [shape: f32[8,768], index: 3, kind: output, shape index: {}]  }
   0x1   :  { %9 = vsyncpa [#allocation6], 0 }
   0x2   :  { %10 = vsyncpa [#allocation4], 0  ;;  %s2074_s12 = smov [#allocation2]   ;;  %s2075_s14 = smov [#allocation5]  }
   0x3   :  { %s17_s13 = sshll.u32 %s2074_s12, 4  ;;  %s26_s15 = sshll.u32 %s2075_s14, 4  ;;  %s18_s13 = int_to_ptr.vmem [resolvable:$true] %s17_s13  ;;  %s2099_s15 = int_to_ptr.vmem [resolvable:$true] %s26_s15 }
   0x4   :  { %s2002_s18 = scalar_lea.hbm %s2165_s0, 512 }
   0x5   :  { %p2003_p0 = scmp.ne.s32.totalorder %s2165_s0, %s2002_s18  ;;  %p2006_p1 = scmp.lt.u32.totalorder %s2002_s18, %s2165_s0 }
   0x7   :  { %p2008_p2 = pnand %p2006_p1, %p2003_p0 }
   0x9   :  { %2011 = shalt.err (!%p2008_p2)
}
   0xa   :  { %s2012_s23 = scalar_lea.vmem %s18_s13, 512  ;;  %p2017_p4 = scmp.lt.s32.totalorder %s18_s13, %s18_s13 }
   0xb   :  { %p2013_p3 = scmp.ne.s32.totalorder %s18_s13, %s2012_s23  ;;  %p2018_p5 = scmp.lt.s32.totalorder %s2012_s23, %s2012_s23 }
   0xd   :  { %p2019_p6 = por %p2018_p5, %p2017_p4 }
   0xf   :  { %p2020_p7 = pnand %p2019_p6, %p2013_p3 }
  0x11   :  { %2023 = shalt.err (!%p2020_p7)
}
  0x12   :  { %20 = dma.hbm_to_vmem [thread:$0]  %s2165_s0, 512, %s18_s13, [#allocation3]  }
  0x13   :  { %s2024_s28 = scalar_lea.hbm %s2166_s1, 24576 }
  0x14   :  { %p2025_p8 = scmp.ne.s32.totalorder %s2166_s1, %s2024_s28  ;;  %p2028_p9 = scmp.lt.u32.totalorder %s2024_s28, %s2166_s1 }
  0x16   :  { %p2030_p10 = pnand %p2028_p9, %p2025_p8 }
  0x18   :  { %2033 = shalt.err (!%p2030_p10)
}
  0x19   :  { %s2034_s6 = scalar_lea.vmem %s2099_s15, 24576  ;;  %p2039_p12 = scmp.lt.s32.totalorder %s2099_s15, %s2099_s15 }
  0x1a   :  { %p2035_p11 = scmp.ne.s32.totalorder %s2099_s15, %s2034_s6  ;;  %p2040_p13 = scmp.lt.s32.totalorder %s2034_s6, %s2034_s6 }
  0x1c   :  { %p2041_p0 = por %p2040_p13, %p2039_p12 }
  0x1e   :  { %p2042_p1 = pnand %p2041_p0, %p2035_p11 }
  0x20   :  { %2045 = shalt.err (!%p2042_p1)
}
  0x21   :  { %s2076_s0 = smov 384   ;;  %s2077_s7 = smov 24  }
  0x22   :  { %32 = dma.hbm_to_vmem [thread:$0]  %s2166_s1, 24576, %s2099_s15, [#allocation6], %s2076_s0, %s2076_s0, %s2077_s7  }
  0x23   :  { %2068 = dma.done.wait [#allocation3], 512  }
  0x24   :  { %2069 = vsyncadd [#allocation3], 4294966784 }
  0x25   :  { %2070 = dma.done.wait [#allocation6], 24576  }
  0x26   :  { %2071 = vsyncadd [#allocation6], 4294942720  ;;  %v1714_v0 = vld [vmem:[#allocation5 + $0x4] ss:$24 sps:$4 sm:$0xff]   ;;  %v1718_v2 = vld [vmem:[#allocation5] ss:$24 sps:$4 sm:$0xff]  }
  0x27   :  { %v1716_v1 = vld [vmem:[#allocation5 + $0x304] ss:$24 sps:$4 sm:$0xff]   ;;  %1233 = vmatprep.subr.bf16.mxu1 %v1714_v0  ;;  %v1719_v3 = vld [vmem:[#allocation5 + $0x300] ss:$24 sps:$4 sm:$0xff]   ;;  %v1720_v4 = vld [vmem:[#allocation5 + $0x34] ss:$24 sps:$4 sm:$0xff]  }
  0x28   :  { %1274 = vmatprep.subr.bf16.mxu0 %v1716_v1  ;;  %1234 = vmatpush1.bf16.msra.mxu1 %v1718_v2  ;;  %v1722_v5 = vld [vmem:[#allocation5 + $0x334] ss:$24 sps:$4 sm:$0xff]   ;;  %v1724_v6 = vld [vmem:[#allocation5 + $0x30] ss:$24 sps:$4 sm:$0xff]   ;;  %v1726_v8 = vld [vmem:[#allocation5 + $0x64] ss:$24 sps:$4 sm:$0xff]  }
  0x29   :  { %1275 = vmatpush1.bf16.msra.mxu0 %v1719_v3  ;;  %1235 = vmatprep.subr.bf16.mxu1 %v1720_v4  ;;  %v1725_v7 = vld [vmem:[#allocation5 + $0x330] ss:$24 sps:$4 sm:$0xff]   ;;  %v1728_v9 = vld [vmem:[#allocation5 + $0x364] ss:$24 sps:$4 sm:$0xff]   ;;  %v1730_v10 = vld [vmem:[#allocation5 + $0x60] ss:$24 sps:$4 sm:$0xff]  }
  0x2a   :  { %1276 = vmatprep.subr.bf16.mxu0 %v1722_v5  ;;  %v1731_v11 = vld [vmem:[#allocation5 + $0x360] ss:$24 sps:$4 sm:$0xff]   ;;  %v1732_v12 = vld [vmem:[#allocation5 + $0x94] ss:$24 sps:$4 sm:$0xff]   ;;  %v1736_v14 = vld [vmem:[#allocation5 + $0x90] ss:$24 sps:$4 sm:$0xff]  }
  0x2b   :  { %v1734_v13 = vld [vmem:[#allocation5 + $0x394] ss:$24 sps:$4 sm:$0xff]   ;;  %v1737_v15 = vld [vmem:[#allocation5 + $0x390] ss:$24 sps:$4 sm:$0xff]   ;;  %v1738_v16 = vld [vmem:[#allocation5 + $0xc4] ss:$24 sps:$4 sm:$0xff]  }
  0x2c   :  { %1236 = vmatpush1.bf16.msra.mxu1 %v1724_v6  ;;  %v1740_v17 = vld [vmem:[#allocation5 + $0x3c4] ss:$24 sps:$4 sm:$0xff]   ;;  %v1742_v18 = vld [vmem:[#allocation5 + $0xc0] ss:$24 sps:$4 sm:$0xff]   ;;  %v1744_v20 = vld [vmem:[#allocation5 + $0xf4] ss:$24 sps:$4 sm:$0xff]  }
  0x2d   :  { %1277 = vmatpush1.bf16.msra.mxu0 %v1725_v7  ;;  %1237 = vmatprep.subr.bf16.mxu1 %v1726_v8  ;;  %v1743_v19 = vld [vmem:[#allocation5 + $0x3c0] ss:$24 sps:$4 sm:$0xff]   ;;  %v1746_v21 = vld [vmem:[#allocation5 + $0x3f4] ss:$24 sps:$4 sm:$0xff]   ;;  %v1748_v22 = vld [vmem:[#allocation5 + $0xf0] ss:$24 sps:$4 sm:$0xff]  }
  0x2e   :  { %1278 = vmatprep.subr.bf16.mxu0 %v1728_v9  ;;  %v1749_v23 = vld [vmem:[#allocation5 + $0x3f0] ss:$24 sps:$4 sm:$0xff]   ;;  %v1750_v24 = vld [vmem:[#allocation5 + $0x124] ss:$24 sps:$4 sm:$0xff]   ;;  %v1754_v26 = vld [vmem:[#allocation5 + $0x120] ss:$24 sps:$4 sm:$0xff]  }
  0x2f   :  { %v1752_v25 = vld [vmem:[#allocation5 + $0x424] ss:$24 sps:$4 sm:$0xff]   ;;  %v1755_v27 = vld [vmem:[#allocation5 + $0x420] ss:$24 sps:$4 sm:$0xff]   ;;  %v1756_v28 = vld [vmem:[#allocation5 + $0x154] ss:$24 sps:$4 sm:$0xff]  }
  0x30   :  { %1238 = vmatpush1.bf16.msra.mxu1 %v1730_v10  ;;  %v1758_v29 = vld [vmem:[#allocation5 + $0x454] ss:$24 sps:$4 sm:$0xff]   ;;  %v1760_v30 = vld [vmem:[#allocation5 + $0x150] ss:$24 sps:$4 sm:$0xff]   ;;  %v1762_v32 = vld [vmem:[#allocation5 + $0x184] ss:$24 sps:$4 sm:$0xff]  }
  0x31   :  { %1279 = vmatpush1.bf16.msra.mxu0 %v1731_v11  ;;  %1239 = vmatprep.subr.bf16.mxu1 %v1732_v12  ;;  %v1761_v31 = vld [vmem:[#allocation5 + $0x450] ss:$24 sps:$4 sm:$0xff]   ;;  %v1764_v33 = vld [vmem:[#allocation5 + $0x484] ss:$24 sps:$4 sm:$0xff]   ;;  %v1766_v34 = vld [vmem:[#allocation5 + $0x180] ss:$24 sps:$4 sm:$0xff]  }
  0x32   :  { %1280 = vmatprep.subr.bf16.mxu0 %v1734_v13  ;;  %v1767_v35 = vld [vmem:[#allocation5 + $0x480] ss:$24 sps:$4 sm:$0xff]   ;;  %v1768_v36 = vld [vmem:[#allocation5 + $0x1b4] ss:$24 sps:$4 sm:$0xff]   ;;  %v1772_v38 = vld [vmem:[#allocation5 + $0x1b0] ss:$24 sps:$4 sm:$0xff]  }
  0x33   :  { %v1770_v37 = vld [vmem:[#allocation5 + $0x4b4] ss:$24 sps:$4 sm:$0xff]   ;;  %v1773_v39 = vld [vmem:[#allocation5 + $0x4b0] ss:$24 sps:$4 sm:$0xff]   ;;  %v1774_v40 = vld [vmem:[#allocation5 + $0x1e4] ss:$24 sps:$4 sm:$0xff]  }
  0x34   :  { %1240 = vmatpush1.bf16.msra.mxu1 %v1736_v14  ;;  %v1776_v41 = vld [vmem:[#allocation5 + $0x4e4] ss:$24 sps:$4 sm:$0xff]   ;;  %v1778_v42 = vld [vmem:[#allocation5 + $0x1e0] ss:$24 sps:$4 sm:$0xff]   ;;  %v1780_v44 = vld [vmem:[#allocation5 + $0x214] ss:$24 sps:$4 sm:$0xff]  }
  0x35   :  { %1281 = vmatpush1.bf16.msra.mxu0 %v1737_v15  ;;  %1241 = vmatprep.subr.bf16.mxu1 %v1738_v16  ;;  %v1779_v43 = vld [vmem:[#allocation5 + $0x4e0] ss:$24 sps:$4 sm:$0xff]   ;;  %v1782_v45 = vld [vmem:[#allocation5 + $0x514] ss:$24 sps:$4 sm:$0xff]   ;;  %v1784_v47 = vld [vmem:[#allocation5 + $0x210] ss:$24 sps:$4 sm:$0xff]  }
  0x36   :  { %1282 = vmatprep.subr.bf16.mxu0 %v1740_v17  ;;  %v42_v46 = vld [vmem:[#allocation2 + $0x8] sm:$0xff]  ;;  %v44_v50 = vld [vmem:[#allocation2 + $0x18] sm:$0xff]  ;;  %v41_v4 = vld [vmem:[#allocation2] sm:$0xff] }
  0x37   :  { %v1785_v48 = vld [vmem:[#allocation5 + $0x510] ss:$24 sps:$4 sm:$0xff]   ;;  %v2130_v49 = vpack.c.bf16 %v42_v46, %v42_v46  ;;  %v1786_v51 = vld [vmem:[#allocation5 + $0x244] ss:$24 sps:$4 sm:$0xff]   ;;  %v2132_v52 = vpack.c.bf16 %v44_v50, %v44_v50  ;;  %v1790_v54 = vld [vmem:[#allocation5 + $0x240] ss:$24 sps:$4 sm:$0xff]   ;;  %v2136_v8 = vpack.c.bf16 %v41_v4, %v41_v4 }
  0x38   :  { %1242 = vmatpush1.bf16.msra.mxu1 %v1742_v18  ;;  %v1788_v53 = vld [vmem:[#allocation5 + $0x544] ss:$24 sps:$4 sm:$0xff]   ;;  %v1791_v55 = vld [vmem:[#allocation5 + $0x540] ss:$24 sps:$4 sm:$0xff]   ;;  %v1792_v56 = vld [vmem:[#allocation5 + $0x274] ss:$24 sps:$4 sm:$0xff]  }
  0x39   :  { %1283 = vmatpush1.bf16.msra.mxu0 %v1743_v19  ;;  %1243 = vmatprep.subr.bf16.mxu1 %v1744_v20  ;;  %v1794_v57 = vld [vmem:[#allocation5 + $0x574] ss:$24 sps:$4 sm:$0xff]   ;;  %v1796_v58 = vld [vmem:[#allocation5 + $0x270] ss:$24 sps:$4 sm:$0xff]   ;;  %v1798_v60 = vld [vmem:[#allocation5 + $0x2a4] ss:$24 sps:$4 sm:$0xff]  }
  0x3a   :  { %1284 = vmatprep.subr.bf16.mxu0 %v1746_v21  ;;  %1265 = vmatprep.mubr.bf16.mxu1 %v2130_v49  ;;  %v1797_v59 = vld [vmem:[#allocation5 + $0x570] ss:$24 sps:$4 sm:$0xff]   ;;  %v1800_v61 = vld [vmem:[#allocation5 + $0x5a4] ss:$24 sps:$4 sm:$0xff]   ;;  %v1802_v62 = vld [vmem:[#allocation5 + $0x2a0] ss:$24 sps:$4 sm:$0xff]  }
  0x3b   :  { %1306 = vmatprep.mubr.bf16.mxu0 %v2132_v52  ;;  %v1803_v63 = vld [vmem:[#allocation5 + $0x5a0] ss:$24 sps:$4 sm:$0xff]   ;;  %v1804_v0 = vld [vmem:[#allocation5 + $0x2d4] ss:$24 sps:$4 sm:$0xff]   ;;  %v1808_v2 = vld [vmem:[#allocation5 + $0x2d0] ss:$24 sps:$4 sm:$0xff]  }
  0x3c   :  { %1244 = vmatpush1.bf16.msra.mxu1 %v1748_v22  ;;  %v1806_v1 = vld [vmem:[#allocation5 + $0x5d4] ss:$24 sps:$4 sm:$0xff]   ;;  %v1809_v3 = vld [vmem:[#allocation5 + $0x5d0] ss:$24 sps:$4 sm:$0xff]   ;;  %v1821_v13 = vld [vmem:[#allocation5 + $0x44] ss:$24 sps:$4 sm:$0xff]  }
  0x3d   :  { %1285 = vmatpush1.bf16.msra.mxu0 %v1749_v23  ;;  %1245 = vmatprep.subr.bf16.mxu1 %v1750_v24  ;;  %v43_v5 = vld [vmem:[#allocation2 + $0x10] sm:$0xff]  ;;  %v1812_v6 = vld [vmem:[#allocation5 + $0xc] ss:$24 sps:$4 sm:$0xff]   ;;  %v1810_v10 = vld [vmem:[#allocation5 + $0x8] ss:$24 sps:$4 sm:$0xff]  }
  0x3e   :  { %1286 = vmatprep.subr.bf16.mxu0 %v1752_v25  ;;  %v1815_v7 = vld [vmem:[#allocation5 + $0x14] ss:$24 sps:$4 sm:$0xff]   ;;  %v2138_v9 = vpack.c.bf16 %v43_v5, %v43_v5  ;;  %v1813_v11 = vld [vmem:[#allocation5 + $0x10] ss:$24 sps:$4 sm:$0xff]   ;;  %v1819_v15 = vld [vmem:[#allocation5 + $0x40] ss:$24 sps:$4 sm:$0xff]  }
  0x3f   :  { %v1818_v12 = vld [vmem:[#allocation5 + $0x3c] ss:$24 sps:$4 sm:$0xff]   ;;  %v1816_v14 = vld [vmem:[#allocation5 + $0x38] ss:$24 sps:$4 sm:$0xff]   ;;  %v1824_v16 = vld [vmem:[#allocation5 + $0x6c] ss:$24 sps:$4 sm:$0xff]  }
  0x40   :  { %1246 = vmatpush1.bf16.msra.mxu1 %v1754_v26  ;;  %v1827_v17 = vld [vmem:[#allocation5 + $0x74] ss:$24 sps:$4 sm:$0xff]   ;;  %v1822_v18 = vld [vmem:[#allocation5 + $0x68] ss:$24 sps:$4 sm:$0xff]   ;;  %v1833_v21 = vld [vmem:[#allocation5 + $0xa4] ss:$24 sps:$4 sm:$0xff]  }
  0x41   :  { %1287 = vmatpush1.bf16.msra.mxu0 %v1755_v27  ;;  %1247 = vmatprep.subr.bf16.mxu1 %v1756_v28  ;;  %v1825_v19 = vld [vmem:[#allocation5 + $0x70] ss:$24 sps:$4 sm:$0xff]   ;;  %v1830_v20 = vld [vmem:[#allocation5 + $0x9c] ss:$24 sps:$4 sm:$0xff]   ;;  %v1831_v23 = vld [vmem:[#allocation5 + $0xa0] ss:$24 sps:$4 sm:$0xff]  }
  0x42   :  { %1288 = vmatprep.subr.bf16.mxu0 %v1758_v29  ;;  %v1828_v22 = vld [vmem:[#allocation5 + $0x98] ss:$24 sps:$4 sm:$0xff]   ;;  %v1836_v24 = vld [vmem:[#allocation5 + $0xcc] ss:$24 sps:$4 sm:$0xff]   ;;  %v1834_v26 = vld [vmem:[#allocation5 + $0xc8] ss:$24 sps:$4 sm:$0xff]  }
  0x43   :  { %v1839_v25 = vld [vmem:[#allocation5 + $0xd4] ss:$24 sps:$4 sm:$0xff]   ;;  %v1837_v27 = vld [vmem:[#allocation5 + $0xd0] ss:$24 sps:$4 sm:$0xff]   ;;  %v1845_v29 = vld [vmem:[#allocation5 + $0x104] ss:$24 sps:$4 sm:$0xff]  }
  0x44   :  { %1248 = vmatpush1.bf16.msra.mxu1 %v1760_v30  ;;  %v1842_v28 = vld [vmem:[#allocation5 + $0xfc] ss:$24 sps:$4 sm:$0xff]   ;;  %v1840_v30 = vld [vmem:[#allocation5 + $0xf8] ss:$24 sps:$4 sm:$0xff]   ;;  %v1870_v50 = vld [vmem:[#allocation5 + $0x1e8] ss:$24 sps:$4 sm:$0xff]  }
  0x45   :  { %1289 = vmatpush1.bf16.msra.mxu0 %v1761_v31  ;;  %1249 = vmatprep.subr.bf16.mxu1 %v1762_v32  ;;  %v1843_v31 = vld [vmem:[#allocation5 + $0x100] ss:$24 sps:$4 sm:$0xff]   ;;  %v1848_v32 = vld [vmem:[#allocation5 + $0x12c] ss:$24 sps:$4 sm:$0xff]   ;;  %v1897_v4 = vld [vmem:[#allocation5 + $0x2b0] ss:$24 sps:$4 sm:$0xff]  }
  0x46   :  { %1290 = vmatprep.subr.bf16.mxu0 %v1764_v33  ;;  %v1851_v33 = vld [vmem:[#allocation5 + $0x134] ss:$24 sps:$4 sm:$0xff]   ;;  %v1864_v46 = vld [vmem:[#allocation5 + $0x1b8] ss:$24 sps:$4 sm:$0xff]  }
  0x47   :  { %v1902_v5 = vld [vmem:[#allocation5 + $0x2dc] ss:$24 sps:$4 sm:$0xff]  }
  0x48   :  { %1250 = vmatpush1.bf16.msra.mxu1 %v1766_v34  ;;  %v1846_v34 = vld [vmem:[#allocation5 + $0x128] ss:$24 sps:$4 sm:$0xff]  }
  0x49   :  { %1291 = vmatpush1.bf16.msra.mxu0 %v1767_v35  ;;  %1251 = vmatprep.subr.bf16.mxu1 %v1768_v36  ;;  %v1849_v35 = vld [vmem:[#allocation5 + $0x130] ss:$24 sps:$4 sm:$0xff]   ;;  %v1854_v36 = vld [vmem:[#allocation5 + $0x15c] ss:$24 sps:$4 sm:$0xff]  }
  0x4a   :  { %1292 = vmatprep.subr.bf16.mxu0 %v1770_v37  ;;  %v1857_v37 = vld [vmem:[#allocation5 + $0x164] ss:$24 sps:$4 sm:$0xff]  }
  0x4c   :  { %1252 = vmatpush1.bf16.msra.mxu1 %v1772_v38  ;;  %v1852_v38 = vld [vmem:[#allocation5 + $0x158] ss:$24 sps:$4 sm:$0xff]  }
  0x4d   :  { %1293 = vmatpush1.bf16.msra.mxu0 %v1773_v39  ;;  %1253 = vmatprep.subr.bf16.mxu1 %v1774_v40  ;;  %v1855_v39 = vld [vmem:[#allocation5 + $0x160] ss:$24 sps:$4 sm:$0xff]   ;;  %v1860_v40 = vld [vmem:[#allocation5 + $0x18c] ss:$24 sps:$4 sm:$0xff]  }
  0x4e   :  { %1294 = vmatprep.subr.bf16.mxu0 %v1776_v41  ;;  %v1863_v41 = vld [vmem:[#allocation5 + $0x194] ss:$24 sps:$4 sm:$0xff]  }
  0x50   :  { %1254 = vmatpush1.bf16.msra.mxu1 %v1778_v42  ;;  %v1858_v42 = vld [vmem:[#allocation5 + $0x188] ss:$24 sps:$4 sm:$0xff]  }
  0x51   :  { %1295 = vmatpush1.bf16.msra.mxu0 %v1779_v43  ;;  %1255 = vmatprep.subr.bf16.mxu1 %v1780_v44  ;;  %v1861_v43 = vld [vmem:[#allocation5 + $0x190] ss:$24 sps:$4 sm:$0xff]   ;;  %v1866_v44 = vld [vmem:[#allocation5 + $0x1bc] ss:$24 sps:$4 sm:$0xff]  }
  0x52   :  { %1296 = vmatprep.subr.bf16.mxu0 %v1782_v45  ;;  %v1869_v45 = vld [vmem:[#allocation5 + $0x1c4] ss:$24 sps:$4 sm:$0xff]  }
  0x54   :  { %1256 = vmatpush1.bf16.msra.mxu1 %v1784_v47  ;;  %v1867_v47 = vld [vmem:[#allocation5 + $0x1c0] ss:$24 sps:$4 sm:$0xff]  }
  0x55   :  { %1297 = vmatpush1.bf16.msra.mxu0 %v1785_v48  ;;  %1257 = vmatprep.subr.bf16.mxu1 %v1786_v51  ;;  %v1872_v48 = vld [vmem:[#allocation5 + $0x1ec] ss:$24 sps:$4 sm:$0xff]   ;;  %v1873_v51 = vld [vmem:[#allocation5 + $0x1f0] ss:$24 sps:$4 sm:$0xff]  }
  0x56   :  { %1298 = vmatprep.subr.bf16.mxu0 %v1788_v53  ;;  %v1878_v53 = vld [vmem:[#allocation5 + $0x21c] ss:$24 sps:$4 sm:$0xff]  }
  0x58   :  { %1258 = vmatpush1.bf16.msra.mxu1 %v1790_v54  ;;  %v1881_v54 = vld [vmem:[#allocation5 + $0x224] ss:$24 sps:$4 sm:$0xff]  }
  0x59   :  { %1299 = vmatpush1.bf16.msra.mxu0 %v1791_v55  ;;  %1259 = vmatprep.subr.bf16.mxu1 %v1792_v56  ;;  %v1876_v55 = vld [vmem:[#allocation5 + $0x218] ss:$24 sps:$4 sm:$0xff]  }
  0x5a   :  { %1300 = vmatprep.subr.bf16.mxu0 %v1794_v57  ;;  %v1879_v56 = vld [vmem:[#allocation5 + $0x220] ss:$24 sps:$4 sm:$0xff]   ;;  %v1884_v57 = vld [vmem:[#allocation5 + $0x24c] ss:$24 sps:$4 sm:$0xff]  }
  0x5c   :  { %1260 = vmatpush1.bf16.msra.mxu1 %v1796_v58  ;;  %v1887_v58 = vld [vmem:[#allocation5 + $0x254] ss:$24 sps:$4 sm:$0xff]  }
  0x5d   :  { %1301 = vmatpush1.bf16.msra.mxu0 %v1797_v59  ;;  %1261 = vmatprep.subr.bf16.mxu1 %v1798_v60  ;;  %v1882_v59 = vld [vmem:[#allocation5 + $0x248] ss:$24 sps:$4 sm:$0xff]  }
  0x5e   :  { %1302 = vmatprep.subr.bf16.mxu0 %v1800_v61  ;;  %v1885_v60 = vld [vmem:[#allocation5 + $0x250] ss:$24 sps:$4 sm:$0xff]   ;;  %v1890_v61 = vld [vmem:[#allocation5 + $0x27c] ss:$24 sps:$4 sm:$0xff]  }
  0x60   :  { %1262 = vmatpush1.bf16.msra.mxu1 %v1802_v62  ;;  %v1893_v62 = vld [vmem:[#allocation5 + $0x284] ss:$24 sps:$4 sm:$0xff]  }
  0x61   :  { %1303 = vmatpush1.bf16.msra.mxu0 %v1803_v63  ;;  %1263 = vmatprep.subr.bf16.mxu1 %v1804_v0  ;;  %v1888_v63 = vld [vmem:[#allocation5 + $0x278] ss:$24 sps:$4 sm:$0xff]  }
  0x62   :  { %1304 = vmatprep.subr.bf16.mxu0 %v1806_v1  ;;  %v1891_v0 = vld [vmem:[#allocation5 + $0x280] ss:$24 sps:$4 sm:$0xff]   ;;  %v1896_v1 = vld [vmem:[#allocation5 + $0x2ac] ss:$24 sps:$4 sm:$0xff]  }
  0x64   :  { %1264 = vmatpush1.bf16.msra.mxu1 %v1808_v2  ;;  %v1899_v2 = vld [vmem:[#allocation5 + $0x2b4] ss:$24 sps:$4 sm:$0xff]  }
  0x65   :  { %1305 = vmatpush1.bf16.msra.mxu0 %v1809_v3  ;;  %1315 = vmatprep.subr.bf16.mxu1 %v1812_v6  ;;  %v1894_v3 = vld [vmem:[#allocation5 + $0x2a8] ss:$24 sps:$4 sm:$0xff]   ;;  %v1905_v6 = vld [vmem:[#allocation5 + $0x2e4] ss:$24 sps:$4 sm:$0xff]  }
  0x66   :  { %1397 = vmatprep.subr.bf16.mxu0 %v1815_v7  ;;  %v1900_v7 = vld [vmem:[#allocation5 + $0x2d8] ss:$24 sps:$4 sm:$0xff]  }
  0x67   :  { %1266 = vmatmul.mubr.bf16.vlgmr.msra.gmra.mrb[0].mxu1 %v2136_v8 }
  0x68   :  { %1307 = vmatmul.mubr.bf16.vlgmr.msra.gmra.mrb[0].mxu0 %v2138_v9  ;;  %1316 = vmatpush1.bf16.msra.mxu1 %v1810_v10  ;;  %v1903_v10 = vld [vmem:[#allocation5 + $0x2e0] ss:$24 sps:$4 sm:$0xff]  }
  0x69   :  { %1398 = vmatpush1.bf16.msra.mxu0 %v1813_v11  ;;  %1317 = vmatprep.subr.bf16.mxu1 %v1818_v12  ;;  %v1908_v11 = vld [vmem:[#allocation5 + $0x30c] ss:$24 sps:$4 sm:$0xff]  }
  0x6a   :  { %1399 = vmatprep.subr.bf16.mxu0 %v1821_v13  ;;  %1347 = vmatprep.mubr.bf16.mxu1 %v2130_v49  ;;  %v1911_v12 = vld [vmem:[#allocation5 + $0x314] ss:$24 sps:$4 sm:$0xff]   ;;  %v1906_v13 = vld [vmem:[#allocation5 + $0x308] ss:$24 sps:$4 sm:$0xff]  }
  0x6b   :  { %1429 = vmatprep.mubr.bf16.mxu0 %v2130_v49  ;;  %v1875_v49 = vld [vmem:[#allocation5 + $0x1f4] ss:$24 sps:$4 sm:$0xff]  }
  0x6c   :  { %1318 = vmatpush1.bf16.msra.mxu1 %v1816_v14  ;;  %v1909_v14 = vld [vmem:[#allocation5 + $0x310] ss:$24 sps:$4 sm:$0xff]  }
  0x6d   :  { %1400 = vmatpush1.bf16.msra.mxu0 %v1819_v15  ;;  %1319 = vmatprep.subr.bf16.mxu1 %v1824_v16  ;;  %v1914_v15 = vld [vmem:[#allocation5 + $0x33c] ss:$24 sps:$4 sm:$0xff]  }
  0x6e   :  { %1401 = vmatprep.subr.bf16.mxu0 %v1827_v17  ;;  %v1917_v16 = vld [vmem:[#allocation5 + $0x344] ss:$24 sps:$4 sm:$0xff]   ;;  %v1912_v17 = vld [vmem:[#allocation5 + $0x338] ss:$24 sps:$4 sm:$0xff]  }
  0x70   :  { %1320 = vmatpush1.bf16.msra.mxu1 %v1822_v18  ;;  %v1915_v18 = vld [vmem:[#allocation5 + $0x340] ss:$24 sps:$4 sm:$0xff]  }
  0x71   :  { %1402 = vmatpush1.bf16.msra.mxu0 %v1825_v19  ;;  %1321 = vmatprep.subr.bf16.mxu1 %v1830_v20  ;;  %v1920_v19 = vld [vmem:[#allocation5 + $0x36c] ss:$24 sps:$4 sm:$0xff]  }
  0x72   :  { %1403 = vmatprep.subr.bf16.mxu0 %v1833_v21  ;;  %v1923_v20 = vld [vmem:[#allocation5 + $0x374] ss:$24 sps:$4 sm:$0xff]   ;;  %v1918_v21 = vld [vmem:[#allocation5 + $0x368] ss:$24 sps:$4 sm:$0xff]  }
  0x74   :  { %1322 = vmatpush1.bf16.msra.mxu1 %v1828_v22  ;;  %v1921_v22 = vld [vmem:[#allocation5 + $0x370] ss:$24 sps:$4 sm:$0xff]  }
  0x75   :  { %1404 = vmatpush1.bf16.msra.mxu0 %v1831_v23  ;;  %1323 = vmatprep.subr.bf16.mxu1 %v1836_v24  ;;  %v1926_v23 = vld [vmem:[#allocation5 + $0x39c] ss:$24 sps:$4 sm:$0xff]   ;;  %v1924_v24 = vld [vmem:[#allocation5 + $0x398] ss:$24 sps:$4 sm:$0xff]  }
  0x76   :  { %1405 = vmatprep.subr.bf16.mxu0 %v1839_v25  ;;  %v1927_v25 = vld [vmem:[#allocation5 + $0x3a0] ss:$24 sps:$4 sm:$0xff]  }
  0x78   :  { %1324 = vmatpush1.bf16.msra.mxu1 %v1834_v26  ;;  %v1932_v26 = vld [vmem:[#allocation5 + $0x3cc] ss:$24 sps:$4 sm:$0xff]  }
  0x79   :  { %1406 = vmatpush1.bf16.msra.mxu0 %v1837_v27  ;;  %1325 = vmatprep.subr.bf16.mxu1 %v1842_v28  ;;  %v1935_v27 = vld [vmem:[#allocation5 + $0x3d4] ss:$24 sps:$4 sm:$0xff]   ;;  %v1930_v28 = vld [vmem:[#allocation5 + $0x3c8] ss:$24 sps:$4 sm:$0xff]  }
  0x7a   :  { %1407 = vmatprep.subr.bf16.mxu0 %v1845_v29  ;;  %v1938_v29 = vld [vmem:[#allocation5 + $0x3fc] ss:$24 sps:$4 sm:$0xff]  }
  0x7c   :  { %1326 = vmatpush1.bf16.msra.mxu1 %v1840_v30  ;;  %v1941_v30 = vld [vmem:[#allocation5 + $0x404] ss:$24 sps:$4 sm:$0xff]  }
  0x7d   :  { %1408 = vmatpush1.bf16.msra.mxu0 %v1843_v31  ;;  %1327 = vmatprep.subr.bf16.mxu1 %v1848_v32  ;;  %v1936_v31 = vld [vmem:[#allocation5 + $0x3f8] ss:$24 sps:$4 sm:$0xff]  }
  0x7e   :  { %1409 = vmatprep.subr.bf16.mxu0 %v1851_v33  ;;  %v1939_v32 = vld [vmem:[#allocation5 + $0x400] ss:$24 sps:$4 sm:$0xff]   ;;  %v1944_v33 = vld [vmem:[#allocation5 + $0x42c] ss:$24 sps:$4 sm:$0xff]  }
  0x80   :  { %1328 = vmatpush1.bf16.msra.mxu1 %v1846_v34  ;;  %v1947_v34 = vld [vmem:[#allocation5 + $0x434] ss:$24 sps:$4 sm:$0xff]  }
  0x81   :  { %1410 = vmatpush1.bf16.msra.mxu0 %v1849_v35  ;;  %1329 = vmatprep.subr.bf16.mxu1 %v1854_v36  ;;  %v1942_v35 = vld [vmem:[#allocation5 + $0x428] ss:$24 sps:$4 sm:$0xff]  }
  0x82   :  { %1411 = vmatprep.subr.bf16.mxu0 %v1857_v37  ;;  %v1945_v36 = vld [vmem:[#allocation5 + $0x430] ss:$24 sps:$4 sm:$0xff]   ;;  %v1950_v37 = vld [vmem:[#allocation5 + $0x45c] ss:$24 sps:$4 sm:$0xff]  }
  0x84   :  { %1330 = vmatpush1.bf16.msra.mxu1 %v1852_v38  ;;  %v1953_v38 = vld [vmem:[#allocation5 + $0x464] ss:$24 sps:$4 sm:$0xff]  }
  0x85   :  { %1412 = vmatpush1.bf16.msra.mxu0 %v1855_v39  ;;  %1331 = vmatprep.subr.bf16.mxu1 %v1860_v40  ;;  %v1948_v39 = vld [vmem:[#allocation5 + $0x458] ss:$24 sps:$4 sm:$0xff]  }
  0x86   :  { %1413 = vmatprep.subr.bf16.mxu0 %v1863_v41  ;;  %v1951_v40 = vld [vmem:[#allocation5 + $0x460] ss:$24 sps:$4 sm:$0xff]   ;;  %v1956_v41 = vld [vmem:[#allocation5 + $0x48c] ss:$24 sps:$4 sm:$0xff]  }
  0x88   :  { %1332 = vmatpush1.bf16.msra.mxu1 %v1858_v42  ;;  %v1959_v42 = vld [vmem:[#allocation5 + $0x494] ss:$24 sps:$4 sm:$0xff]  }
  0x89   :  { %1414 = vmatpush1.bf16.msra.mxu0 %v1861_v43  ;;  %1333 = vmatprep.subr.bf16.mxu1 %v1866_v44  ;;  %v1954_v43 = vld [vmem:[#allocation5 + $0x488] ss:$24 sps:$4 sm:$0xff]  }
  0x8a   :  { %1415 = vmatprep.subr.bf16.mxu0 %v1869_v45  ;;  %v1957_v44 = vld [vmem:[#allocation5 + $0x490] ss:$24 sps:$4 sm:$0xff]   ;;  %v1962_v45 = vld [vmem:[#allocation5 + $0x4bc] ss:$24 sps:$4 sm:$0xff]  }
  0x8c   :  { %1334 = vmatpush1.bf16.msra.mxu1 %v1864_v46  ;;  %v1965_v46 = vld [vmem:[#allocation5 + $0x4c4] ss:$24 sps:$4 sm:$0xff]  }
  0x8d   :  { %1416 = vmatpush1.bf16.msra.mxu0 %v1867_v47  ;;  %1335 = vmatprep.subr.bf16.mxu1 %v1872_v48  ;;  %v1960_v47 = vld [vmem:[#allocation5 + $0x4b8] ss:$24 sps:$4 sm:$0xff]  }
  0x8e   :  { %1417 = vmatprep.subr.bf16.mxu0 %v1875_v49  ;;  %v1963_v48 = vld [vmem:[#allocation5 + $0x4c0] ss:$24 sps:$4 sm:$0xff]   ;;  %v1968_v49 = vld [vmem:[#allocation5 + $0x4ec] ss:$24 sps:$4 sm:$0xff]  }
  0x90   :  { %1336 = vmatpush1.bf16.msra.mxu1 %v1870_v50  ;;  %v1971_v50 = vld [vmem:[#allocation5 + $0x4f4] ss:$24 sps:$4 sm:$0xff]  }
  0x91   :  { %1418 = vmatpush1.bf16.msra.mxu0 %v1873_v51  ;;  %1337 = vmatprep.subr.bf16.mxu1 %v1878_v53  ;;  %v1966_v51 = vld [vmem:[#allocation5 + $0x4e8] ss:$24 sps:$4 sm:$0xff]  }
  0x92   :  { %1419 = vmatprep.subr.bf16.mxu0 %v1881_v54  ;;  %v1969_v53 = vld [vmem:[#allocation5 + $0x4f0] ss:$24 sps:$4 sm:$0xff]   ;;  %v1974_v54 = vld [vmem:[#allocation5 + $0x51c] ss:$24 sps:$4 sm:$0xff]  }
  0x94   :  { %1338 = vmatpush1.bf16.msra.mxu1 %v1876_v55  ;;  %v1977_v55 = vld [vmem:[#allocation5 + $0x524] ss:$24 sps:$4 sm:$0xff]  }
  0x95   :  { %1420 = vmatpush1.bf16.msra.mxu0 %v1879_v56  ;;  %1339 = vmatprep.subr.bf16.mxu1 %v1884_v57  ;;  %v1972_v56 = vld [vmem:[#allocation5 + $0x518] ss:$24 sps:$4 sm:$0xff]  }
  0x96   :  { %1421 = vmatprep.subr.bf16.mxu0 %v1887_v58  ;;  %v1975_v57 = vld [vmem:[#allocation5 + $0x520] ss:$24 sps:$4 sm:$0xff]   ;;  %v1980_v58 = vld [vmem:[#allocation5 + $0x54c] ss:$24 sps:$4 sm:$0xff]  }
  0x98   :  { %1340 = vmatpush1.bf16.msra.mxu1 %v1882_v59  ;;  %v1983_v59 = vld [vmem:[#allocation5 + $0x554] ss:$24 sps:$4 sm:$0xff]  }
  0x99   :  { %1422 = vmatpush1.bf16.msra.mxu0 %v1885_v60  ;;  %1341 = vmatprep.subr.bf16.mxu1 %v1890_v61  ;;  %v1978_v60 = vld [vmem:[#allocation5 + $0x548] ss:$24 sps:$4 sm:$0xff]  }
  0x9a   :  { %1423 = vmatprep.subr.bf16.mxu0 %v1893_v62  ;;  %v1981_v61 = vld [vmem:[#allocation5 + $0x550] ss:$24 sps:$4 sm:$0xff]   ;;  %v1986_v62 = vld [vmem:[#allocation5 + $0x57c] ss:$24 sps:$4 sm:$0xff]  }
  0x9c   :  { %1342 = vmatpush1.bf16.msra.mxu1 %v1888_v63  ;;  %v1989_v63 = vld [vmem:[#allocation5 + $0x584] ss:$24 sps:$4 sm:$0xff]  }
  0x9d   :  { %1424 = vmatpush1.bf16.msra.mxu0 %v1891_v0  ;;  %1343 = vmatprep.subr.bf16.mxu1 %v1896_v1  ;;  %v1984_v0 = vld [vmem:[#allocation5 + $0x578] ss:$24 sps:$4 sm:$0xff]  }
  0x9e   :  { %1425 = vmatprep.subr.bf16.mxu0 %v1899_v2  ;;  %v1987_v1 = vld [vmem:[#allocation5 + $0x580] ss:$24 sps:$4 sm:$0xff]   ;;  %v1992_v2 = vld [vmem:[#allocation5 + $0x5ac] ss:$24 sps:$4 sm:$0xff]  }
  0xa0   :  { %1344 = vmatpush1.bf16.msra.mxu1 %v1894_v3  ;;  %v1995_v3 = vld [vmem:[#allocation5 + $0x5b4] ss:$24 sps:$4 sm:$0xff]  }
  0xa1   :  { %1426 = vmatpush1.bf16.msra.mxu0 %v1897_v4  ;;  %1345 = vmatprep.subr.bf16.mxu1 %v1902_v5  ;;  %v1990_v4 = vld [vmem:[#allocation5 + $0x5a8] ss:$24 sps:$4 sm:$0xff]  }
  0xa2   :  { %1427 = vmatprep.subr.bf16.mxu0 %v1905_v6  ;;  %v1993_v5 = vld [vmem:[#allocation5 + $0x5b0] ss:$24 sps:$4 sm:$0xff]   ;;  %v1998_v6 = vld [vmem:[#allocation5 + $0x5dc] ss:$24 sps:$4 sm:$0xff]  }
  0xa4   :  { %1346 = vmatpush1.bf16.msra.mxu1 %v1900_v7  ;;  %v2001_v7 = vld [vmem:[#allocation5 + $0x5e4] ss:$24 sps:$4 sm:$0xff]  }
  0xa5   :  { %1428 = vmatpush1.bf16.msra.mxu0 %v1903_v10  ;;  %1356 = vmatprep.subr.bf16.mxu1 %v1908_v11  ;;  %v1996_v10 = vld [vmem:[#allocation5 + $0x5d8] ss:$24 sps:$4 sm:$0xff]  }
  0xa6   :  { %1438 = vmatprep.subr.bf16.mxu0 %v1911_v12  ;;  %v1999_v11 = vld [vmem:[#allocation5 + $0x5e0] ss:$24 sps:$4 sm:$0xff]   ;;  %v243_v12 = vlaneseq }
  0xa7   :  { %1348 = vmatmul.mubr.bf16.vlgmr.msra.gmra.mrb[4].mxu1 %v2136_v8 }
  0xa8   :  { %1430 = vmatmul.mubr.bf16.vlgmr.msra.gmra.mrb[4].mxu0 %v2136_v8  ;;  %1357 = vmatpush1.bf16.msra.mxu1 %v1906_v13  ;;  %v1929_v8 = vld [vmem:[#allocation5 + $0x3a4] ss:$24 sps:$4 sm:$0xff]   ;;  %v244_v13 = vshrl.u32 %v243_v12, 7 }
  0xa9   :  { %1439 = vmatpush1.bf16.msra.mxu0 %v1909_v14  ;;  %1358 = vmatprep.subr.bf16.mxu1 %v1914_v15  ;;  %v241_v15 = vld [vmem:[%s2167_s2] sm:$0x3f]  ;;  %s2078_s2 = smov [#allocation7]  }
  0xaa   :  { %1440 = vmatprep.subr.bf16.mxu0 %v1917_v16  ;;  %1388 = vmatprep.mubr.bf16.mxu1 %v2132_v52  ;;  %v245_v14 = vsub.s32 0, %v244_v13  ;;  %v249_v16 = vsub.s32 1, %v244_v13  ;;  %s1491_s11 = sshll.u32 %s2078_s2, 4  ;;  %s1492_s11 = int_to_ptr.vmem [resolvable:$true] %s1491_s11 }
  0xab   :  { %1470 = vmatprep.mubr.bf16.mxu0 %v2132_v52  ;;  %v1933_v52 = vld [vmem:[#allocation5 + $0x3d0] ss:$24 sps:$4 sm:$0xff]   ;;  %s2046_s12 = scalar_lea.vmem %s1492_s11, 768  ;;  %p2051_p3 = scmp.lt.s32.totalorder %s1492_s11, %s1492_s11 }
  0xac   :  { %1359 = vmatpush1.bf16.msra.mxu1 %v1912_v17  ;;  %v246_v17 = vrot.slane %v241_v15, %v245_v14  ;;  %p2047_p2 = scmp.ne.s32.totalorder %s1492_s11, %s2046_s12  ;;  %p2052_p4 = scmp.lt.s32.totalorder %s2046_s12, %s2046_s12 }
  0xad   :  { %1441 = vmatpush1.bf16.msra.mxu0 %v1915_v18  ;;  %1360 = vmatprep.subr.bf16.mxu1 %v1920_v19  ;;  %v250_v18 = vrot.slane %v241_v15, %v249_v16 }
  0xae   :  { %1442 = vmatprep.subr.bf16.mxu0 %v1923_v20  ;;  %p2053_p5 = por %p2052_p4, %p2051_p3 }
  0xb0   :  { %1361 = vmatpush1.bf16.msra.mxu1 %v1918_v21  ;;  %p2054_p6 = pnand %p2053_p5, %p2047_p2 }
  0xb1   :  { %1443 = vmatpush1.bf16.msra.mxu0 %v1921_v22  ;;  %1362 = vmatprep.subr.bf16.mxu1 %v1926_v23 }
  0xb2   :  { %1444 = vmatprep.subr.bf16.mxu0 %v1929_v8 }
  0xb4   :  { %1363 = vmatpush1.bf16.msra.mxu1 %v1924_v24 }
  0xb5   :  { %1445 = vmatpush1.bf16.msra.mxu0 %v1927_v25  ;;  %1364 = vmatprep.subr.bf16.mxu1 %v1932_v26 }
  0xb6   :  { %1446 = vmatprep.subr.bf16.mxu0 %v1935_v27 }
  0xb8   :  { %1365 = vmatpush1.bf16.msra.mxu1 %v1930_v28 }
  0xb9   :  { %1447 = vmatpush1.bf16.msra.mxu0 %v1933_v52  ;;  %1366 = vmatprep.subr.bf16.mxu1 %v1938_v29  ;;  %v253_v52 = vsub.s32 2, %v244_v13  ;;  %v261_v29 = vsub.s32 4, %v244_v13 }
  0xba   :  { %1448 = vmatprep.subr.bf16.mxu0 %v1941_v30  ;;  %v257_v30 = vsub.s32 3, %v244_v13 }
  0xbc   :  { %1367 = vmatpush1.bf16.msra.mxu1 %v1936_v31  ;;  %v265_v31 = vsub.s32 5, %v244_v13 }
  0xbd   :  { %1449 = vmatpush1.bf16.msra.mxu0 %v1939_v32  ;;  %1368 = vmatprep.subr.bf16.mxu1 %v1944_v33  ;;  %v254_v32 = vrot.slane %v241_v15, %v253_v52  ;;  %v262_v33 = vrot.slane %v241_v15, %v261_v29 }
  0xbe   :  { %1450 = vmatprep.subr.bf16.mxu0 %v1947_v34  ;;  %v258_v34 = vrot.slane %v241_v15, %v257_v30 }
  0xc0   :  { %1369 = vmatpush1.bf16.msra.mxu1 %v1942_v35  ;;  %v266_v35 = vrot.slane %v241_v15, %v265_v31 }
  0xc1   :  { %1451 = vmatpush1.bf16.msra.mxu0 %v1945_v36  ;;  %1370 = vmatprep.subr.bf16.mxu1 %v1950_v37 }
  0xc2   :  { %1452 = vmatprep.subr.bf16.mxu0 %v1953_v38 }
  0xc4   :  { %1371 = vmatpush1.bf16.msra.mxu1 %v1948_v39 }
  0xc5   :  { %1453 = vmatpush1.bf16.msra.mxu0 %v1951_v40  ;;  %1372 = vmatprep.subr.bf16.mxu1 %v1956_v41 }
  0xc6   :  { %1454 = vmatprep.subr.bf16.mxu0 %v1959_v42 }
  0xc8   :  { %1373 = vmatpush1.bf16.msra.mxu1 %v1954_v43 }
  0xc9   :  { %1455 = vmatpush1.bf16.msra.mxu0 %v1957_v44  ;;  %1374 = vmatprep.subr.bf16.mxu1 %v1962_v45 }
  0xca   :  { %1456 = vmatprep.subr.bf16.mxu0 %v1965_v46 }
  0xcc   :  { %1375 = vmatpush1.bf16.msra.mxu1 %v1960_v47 }
  0xcd   :  { %1457 = vmatpush1.bf16.msra.mxu0 %v1963_v48  ;;  %1376 = vmatprep.subr.bf16.mxu1 %v1968_v49 }
  0xce   :  { %1458 = vmatprep.subr.bf16.mxu0 %v1971_v50 }
  0xd0   :  { %1377 = vmatpush1.bf16.msra.mxu1 %v1966_v51 }
  0xd1   :  { %1459 = vmatpush1.bf16.msra.mxu0 %v1969_v53  ;;  %1378 = vmatprep.subr.bf16.mxu1 %v1974_v54 }
  0xd2   :  { %1460 = vmatprep.subr.bf16.mxu0 %v1977_v55 }
  0xd4   :  { %1379 = vmatpush1.bf16.msra.mxu1 %v1972_v56 }
  0xd5   :  { %1461 = vmatpush1.bf16.msra.mxu0 %v1975_v57  ;;  %1380 = vmatprep.subr.bf16.mxu1 %v1980_v58 }
  0xd6   :  { %1462 = vmatprep.subr.bf16.mxu0 %v1983_v59 }
  0xd8   :  { %1381 = vmatpush1.bf16.msra.mxu1 %v1978_v60 }
  0xd9   :  { %1463 = vmatpush1.bf16.msra.mxu0 %v1981_v61  ;;  %1382 = vmatprep.subr.bf16.mxu1 %v1986_v62 }
  0xda   :  { %1464 = vmatprep.subr.bf16.mxu0 %v1989_v63 }
  0xdc   :  { %1383 = vmatpush1.bf16.msra.mxu1 %v1984_v0 }
  0xdd   :  { %1465 = vmatpush1.bf16.msra.mxu0 %v1987_v1  ;;  %1384 = vmatprep.subr.bf16.mxu1 %v1992_v2 }
  0xde   :  { %1466 = vmatprep.subr.bf16.mxu0 %v1995_v3 }
  0xe0   :  { %1385 = vmatpush1.bf16.msra.mxu1 %v1990_v4 }
  0xe1   :  { %1467 = vmatpush1.bf16.msra.mxu0 %v1993_v5  ;;  %1386 = vmatprep.subr.bf16.mxu1 %v1998_v6 }
  0xe2   :  { %1468 = vmatprep.subr.bf16.mxu0 %v2001_v7 }
  0xe4   :  { %1387 = vmatpush1.bf16.msra.mxu1 %v1996_v10 }
  0xe5   :  { %1469 = vmatpush1.bf16.msra.mxu0 %v1999_v11 }
  0xe7   :  { %1389 = vmatmul.mubr.bf16.vlgmr.msra.gmra.mrb[4].mxu1 %v2138_v9 }
  0xe8   :  { %1471 = vmatmul.mubr.bf16.vlgmr.msra.gmra.mrb[4].mxu0 %v2138_v9 }
 0x13a   :  { %v1267_v19 = vpop.f32.mrb[0].mxu1 }
 0x13b   :  { %v1308_v20 = vpop.f32.mrb[0].mxu0  ;;  %v1268_v21 = vadd.f32 %v1267_v19, %v246_v17  ;;  %v1269_v22 = vpop.f32.mrb[1].mxu1 }
 0x13c   :  { %v1310_v23 = vpop.f32.mrb[1].mxu0  ;;  %v1270_v8 = vadd.f32 %v1269_v22, %v250_v18  ;;  %v1271_v24 = vpop.f32.mrb[2].mxu1 }
 0x13d   :  { %v1312_v25 = vpop.f32.mrb[2].mxu0  ;;  %v1309_v26 = vadd.f32 %v1308_v20, %v1268_v21  ;;  %v1272_v9 = vpop.f32.mrb[3].mxu1 }
 0x13e   :  { %v1313_v27 = vpop.f32.mrb[3].mxu0  ;;  %v1311_v28 = vadd.f32 %v1310_v23, %v1270_v8 }
 0x13f   :  { %1479 = vst [vmem:[#allocation7] sm:$0xff] %v1309_v26 }
 0x140   :  { %1480 = vst [vmem:[#allocation7 + $0x8] sm:$0xff] %v1311_v28 }
 0x1ba   :  { %v1390_v36 = vpop.f32.mrb[4].mxu1 }
 0x1bb   :  { %v1472_v37 = vpop.f32.mrb[4].mxu0  ;;  %v1697_v38 = vadd.f32 %v1390_v36, %v254_v32  ;;  %v1392_v40 = vpop.f32.mrb[5].mxu1 }
 0x1bc   :  { %v1699_v39 = vadd.f32 %v1472_v37, %v262_v33  ;;  %v1474_v41 = vpop.f32.mrb[5].mxu0  ;;  %v1698_v42 = vadd.f32 %v1392_v40, %v258_v34  ;;  %v1394_v44 = vpop.f32.mrb[6].mxu1 }
 0x1bd   :  { %v1700_v43 = vadd.f32 %v1474_v41, %v266_v35  ;;  %v1476_v45 = vpop.f32.mrb[6].mxu0  ;;  %1481 = vst [vmem:[#allocation7 + $0x10] sm:$0xff] %v1697_v38  ;;  %v1395_v46 = vpop.f32.mrb[7].mxu1 }
 0x1be   :  { %1483 = vst [vmem:[#allocation7 + $0x20] sm:$0xff] %v1699_v39  ;;  %v1477_v47 = vpop.f32.mrb[7].mxu0  ;;  %1482 = vst [vmem:[#allocation7 + $0x18] sm:$0xff] %v1698_v42 }
 0x1bf   :  { %1484 = vst [vmem:[#allocation7 + $0x28] sm:$0xff] %v1700_v43 }
 0x1c0   :  { %2057 = shalt.err (!%p2054_p6)
}
 0x1c1   :  { %s2058_s15 = scalar_lea.hbm %s2168_s3, 768 }
 0x1c2   :  { %p2059_p7 = scmp.ne.s32.totalorder %s2168_s3, %s2058_s15  ;;  %p2062_p8 = scmp.lt.u32.totalorder %s2058_s15, %s2168_s3 }
 0x1c4   :  { %p2064_p9 = pnand %p2062_p8, %p2059_p7 }
 0x1c6   :  { %2067 = shalt.err (!%p2064_p9)
}
 0x1c7   :  { %1494 = dma.vmem_to_hbm [thread:$0]  %s1492_s11, 768, %s2168_s3, [#allocation4]  }
 0x1c8   :  { %2072 = dma.done.wait [#allocation4], 768  }
 0x1c9   :  { %2073 = vsyncadd [#allocation4], 4294966528 }
 0x1ca   :  { %1498 = vsyncpa [#allocation3], 1 }
 0x1cb   :  { %1499 = vsyncpa [#allocation6], 1 }
 0x1cc   :  { %1500 = vsyncpa [#allocation4], 1 }

</bundles_post_ra>
